<compile_context>
chip_gen: v5e
topology: v5e:2x2
jax: 0.10.0
libtpu: 0.0.40
codegen_flags: <defaults>
</compile_context>

<pallas_src>
import jax
import jax.numpy as jnp
from jax.experimental import pallas as pl
from jax.experimental.pallas import tpu as pltpu


def _round_up(x, m):
    return ((x + m - 1) // m) * m


# ----------------------------------------------------------------------------
# Kernels
# ----------------------------------------------------------------------------
def _qkv_fused_kernel(x_ref, w_ref, b_ref, q_ref, k_ref, v_ref):
    """One fused MXU pass: (tm, D) @ (D, 3*Dp) -> f32, + bias, split q/k/v.

    x is cast to the weight dtype on the VPU (free under MXU slack); the
    accumulator slices are at 256-lane-aligned boundaries, so the three stores
    are lane-dense and need no relayout.
    """
    x = x_ref[...].astype(w_ref.dtype)
    acc = jnp.dot(x, w_ref[...], preferred_element_type=jnp.float32)
    acc = acc + b_ref[...]
    dp = q_ref.shape[1]
    q_ref[...] = acc[:, 0:dp].astype(q_ref.dtype)
    k_ref[...] = acc[:, dp:2 * dp].astype(k_ref.dtype)
    v_ref[...] = acc[:, 2 * dp:3 * dp].astype(v_ref.dtype)


def _qkv_coltile_kernel(x_ref, w_ref, b_ref, o_ref):
    """Column-tiled variant: (tm, D) @ (D, tn) -> one fused-slab column block."""
    x = x_ref[...].astype(w_ref.dtype)
    acc = jnp.dot(x, w_ref[...], preferred_element_type=jnp.float32)
    o_ref[...] = (acc + b_ref[...]).astype(o_ref.dtype)


# ----------------------------------------------------------------------------
# Wrapper
# ----------------------------------------------------------------------------
def self_attention_qkv(x, wq, bq, wk, bk, wv, bv, *, tm=None,
                       compute_dtype=jnp.bfloat16, out_dtype=None,
                       force_column_tiled=False):
    """x: (B, S, D). wq/wk/wv: (D, D) torch-style (out, in). b*: (D,).

    Returns (q, k, v), each (B, S, D); same math as torch.nn.Linear:
    q = x @ wq.T + bq, etc.
    """
    B, S, D = x.shape
    M = B * S
    if out_dtype is None:
        out_dtype = compute_dtype          # bf16 outputs halve store traffic

    LANE = 256                             # v6e/v7x MXU tile; multiple of 128
    Dp = _round_up(D, LANE)
    Nf = 3 * Dp

    # ---- fused (in, out) weight with per-projection lane padding -------------
    # Single transpose/concat; under jit with constant weights this folds away.
    # For production keep weights stored pre-fused in (in, out) layout.
    def _prep(w, b):
        wt = w.T                                           # (D_in, D_out)
        if Dp != D:
            wt = jnp.pad(wt, ((0, 0), (0, Dp - D)))
            b = jnp.pad(b, ((0, Dp - D),))
        return wt, b

    wqt, bqp = _prep(wq, bq)
    wkt, bkp = _prep(wk, bk)
    wvt, bvp = _prep(wv, bv)
    w_fused = jnp.concatenate([wqt, wkt, wvt], axis=1).astype(compute_dtype)
    b_fused = jnp.concatenate([bqp, bkp, bvp], axis=0).reshape(1, Nf)
    b_fused = b_fused.astype(jnp.float32)

    x2 = x.reshape(M, D)                   # NOTE: no wrapper-side cast of x

    x_bytes = jnp.dtype(x.dtype).itemsize
    w_bytes = jnp.dtype(compute_dtype).itemsize
    o_bytes = jnp.dtype(out_dtype).itemsize

    # ---- generation-aware VMEM budget / default row tile ----------------------
    try:
        vmem_cap = int(pltpu.get_tpu_info().vmem_capacity_bytes)
    except Exception:
        vmem_cap = 64 << 20                # conservative (v7x per-TC) fallback
    vmem_budget = int(vmem_cap * 0.8)
    tm_default = 256 if vmem_cap <= (64 << 20) else 512   # v7x vs v5e/v6e

    tm_req = tm_default if tm is None else tm
    tm_eff = max(16, min(_round_up(tm_req, 16), _round_up(M, 16)))

    # ---- path 1: fully resident fused (D, 3*Dp) weight ------------------------
    def _need_fused(tm_, wbuf):
        return (2 * tm_ * D * x_bytes                    # x tiles (double-buffered)
                + wbuf * (D * Nf * w_bytes + Nf * 4)     # fused weight + bias
                + 3 * 2 * tm_ * Dp * o_bytes             # q/k/v tiles (double-buffered)
                + tm_ * Nf * 4)                          # f32 accumulator headroom

    use_fused = (not force_column_tiled) and \
        _need_fused(min(tm_eff, 128), 1) <= vmem_budget

    if use_fused:
        while tm_eff > 32 and _need_fused(tm_eff, 1) > vmem_budget:
            tm_eff = max(32, (tm_eff // 2) // 16 * 16)
        M_pad = _round_up(M, tm_eff)
        x_in = x2 if M_pad == M else jnp.pad(x2, ((0, M_pad - M), (0, 0)))
        grid = (M_pad // tm_eff,)

        cost = pl.CostEstimate(
            flops=2 * M_pad * D * Nf, transcendentals=0,
            bytes_accessed=(M_pad * D * x_bytes + D * Nf * w_bytes + Nf * 4
                            + 3 * M_pad * Dp * o_bytes))
        vmem_limit = int(min(max(_need_fused(tm_eff, 2) + (4 << 20), 32 << 20),
                             int(vmem_cap * 0.9)))

        def _run(single_buffer_weights):
            if single_buffer_weights:
                w_spec = pl.BlockSpec((D, Nf), lambda i: (0, 0),
                                      pipeline_mode=pl.Buffered(1))
                b_spec = pl.BlockSpec((1, Nf), lambda i: (0, 0),
                                      pipeline_mode=pl.Buffered(1))
            else:
                w_spec = pl.BlockSpec((D, Nf), lambda i: (0, 0))
                b_spec = pl.BlockSpec((1, Nf), lambda i: (0, 0))
            return pl.pallas_call(
                _qkv_fused_kernel,
                out_shape=[jax.ShapeDtypeStruct((M_pad, Dp), out_dtype)
                           for _ in range(3)],
                grid_spec=pltpu.PrefetchScalarGridSpec(
                    num_scalar_prefetch=0,
                    grid=grid,
                    in_specs=[pl.BlockSpec((tm_eff, D), lambda i: (i, 0)),
                              w_spec, b_spec],
                    out_specs=[pl.BlockSpec((tm_eff, Dp), lambda i: (i, 0))
                               for _ in range(3)],
                ),
                compiler_params=pltpu.CompilerParams(
                    dimension_semantics=("parallel",),
                    vmem_limit_bytes=vmem_limit),
                cost_estimate=cost,
            )(x_in, w_fused, b_fused)

        try:
            qp, kp, vp = _run(True)    # weight/bias single-buffered (resident)
        except Exception:
            qp, kp, vp = _run(False)   # older JAX: default double buffering

        def _strip(y):
            if M_pad != M or Dp != D:
                y = y[:M, :D]
            return y.reshape(B, S, D)

        return _strip(qp), _strip(kp), _strip(vp)

    # ---- path 2: column-tiled fused slab (large D fallback) -------------------
    # Weight column block (D, tn) stays resident across all row tiles (column
    # axis outermost), so the fused weight is read from HBM exactly once.
    # TODO(synk): add a K-tiled accumulator path for D so large that even a
    # (D, 256) weight column block does not fit in VMEM.
    def _need_col(tm_, tn_, wbuf):
        return (2 * tm_ * D * x_bytes
                + wbuf * (D * tn_ * w_bytes + tn_ * 4)
                + 2 * tm_ * tn_ * o_bytes
                + tm_ * tn_ * 4)

    tn = LANE
    cand = Nf
    while cand >= LANE:
        if Nf % cand == 0 and _need_col(min(tm_eff, 128), cand, 1) <= vmem_budget:
            tn = cand
            break
        cand -= LANE
    while tm_eff > 32 and _need_col(tm_eff, tn, 1) > vmem_budget:
        tm_eff = max(32, (tm_eff // 2) // 16 * 16)

    M_pad = _round_up(M, tm_eff)
    x_in = x2 if M_pad == M else jnp.pad(x2, ((0, M_pad - M), (0, 0)))
    n_col = Nf // tn
    grid = (n_col, M_pad // tm_eff)

    cost = pl.CostEstimate(
        flops=2 * M_pad * D * Nf, transcendentals=0,
        bytes_accessed=(n_col * M_pad * D * x_bytes + D * Nf * w_bytes + Nf * 4
                        + M_pad * Nf * o_bytes))
    vmem_limit = int(min(max(_need_col(tm_eff, tn, 2) + (4 << 20), 32 << 20),
                         int(vmem_cap * 0.9)))

    def _run_col(single_buffer_weights):
        if single_buffer_weights:
            w_spec = pl.BlockSpec((D, tn), lambda j, i: (0, j),
                                  pipeline_mode=pl.Buffered(1))
            b_spec = pl.BlockSpec((1, tn), lambda j, i: (0, j),
                                  pipeline_mode=pl.Buffered(1))
        else:
            w_spec = pl.BlockSpec((D, tn), lambda j, i: (0, j))
            b_spec = pl.BlockSpec((1, tn), lambda j, i: (0, j))
        return pl.pallas_call(
            _qkv_coltile_kernel,
            out_shape=jax.ShapeDtypeStruct((M_pad, Nf), out_dtype),
            grid_spec=pltpu.PrefetchScalarGridSpec(
                num_scalar_prefetch=0,
                grid=grid,
                in_specs=[pl.BlockSpec((tm_eff, D), lambda j, i: (i, 0)),
                          w_spec, b_spec],
                out_specs=pl.BlockSpec((tm_eff, tn), lambda j, i: (i, j)),
            ),
            compiler_params=pltpu.CompilerParams(
                dimension_semantics=("parallel", "parallel"),
                vmem_limit_bytes=vmem_limit),
            cost_estimate=cost,
        )(x_in, w_fused, b_fused)

    try:
        y = _run_col(True)
    except Exception:
        y = _run_col(False)

    q = y[:M, 0:D].reshape(B, S, D)
    k = y[:M, Dp:Dp + D].reshape(B, S, D)
    v = y[:M, 2 * Dp:2 * Dp + D].reshape(B, S, D)
    return q, k, v


def _init_linear_params(key, n_module):
    """Deterministic init mimicking torch.nn.Linear default (uniform +/- 1/sqrt(in))."""
    k_w, k_b = jax.random.split(key)
    bound = 1.0 / jnp.sqrt(jnp.float32(n_module))
    w = jax.random.uniform(k_w, (n_module, n_module), jnp.float32, -bound, bound)
    b = jax.random.uniform(k_b, (n_module,), jnp.float32, -bound, bound)
    return w, b


if __name__ == "__main__":
    n_module = 32
    batch, seq = 2, 8

    root = jax.random.PRNGKey(0)
    kx, kq, kk, kv = jax.random.split(root, 4)

    x = jax.random.normal(kx, (batch, seq, n_module), jnp.float32)
    wq, bq = _init_linear_params(kq, n_module)
    wk, bk = _init_linear_params(kk, n_module)
    wv, bv = _init_linear_params(kv, n_module)

    # Pure-JAX reference (same math as torch.nn.Linear).
    q_ref = x @ wq.T + bq
    k_ref = x @ wk.T + bk
    v_ref = x @ wv.T + bv

    # f32 compute / f32 out path: bitwise-close to the reference.
    qf, kf, vf = self_attention_qkv(x, wq, bq, wk, bk, wv, bv,
                                    compute_dtype=jnp.float32,
                                    out_dtype=jnp.float32)
    jax.block_until_ready((qf, kf, vf))
    assert jnp.allclose(qf, q_ref, atol=1e-5, rtol=1e-5)
    assert jnp.allclose(kf, k_ref, atol=1e-5, rtol=1e-5)
    assert jnp.allclose(vf, v_ref, atol=1e-5, rtol=1e-5)

    # Column-tiled fallback path (coverage for the large-D code path).
    qc, kc, vc = self_attention_qkv(x, wq, bq, wk, bk, wv, bv,
                                    compute_dtype=jnp.float32,
                                    out_dtype=jnp.float32,
                                    force_column_tiled=True)
    jax.block_until_ready((qc, kc, vc))
    assert jnp.allclose(qc, q_ref, atol=1e-5, rtol=1e-5)
    assert jnp.allclose(kc, k_ref, atol=1e-5, rtol=1e-5)
    assert jnp.allclose(vc, v_ref, atol=1e-5, rtol=1e-5)

    # Default fast path: bf16 MXU operands + bf16 outputs, f32 accumulation.
    q, k, v = self_attention_qkv(x, wq, bq, wk, bk, wv, bv)
    jax.block_until_ready((q, k, v))
    assert jnp.allclose(q.astype(jnp.float32), q_ref, atol=3e-2, rtol=3e-2)
    assert jnp.allclose(k.astype(jnp.float32), k_ref, atol=3e-2, rtol=3e-2)
    assert jnp.allclose(v.astype(jnp.float32), v_ref, atol=3e-2, rtol=3e-2)

    print("KERNEL_OK")
</pallas_src>

<mosaic_0001>
module attributes {stable_mosaic.version = 11 : i64} {
  func.func @_qkv_fused_kernel(%arg0: i32, %arg1: memref<16x32xf32, #tpu.memory_space<vmem>>, %arg2: memref<32x768xf32, #tpu.memory_space<vmem>>, %arg3: memref<1x768xf32, #tpu.memory_space<vmem>>, %arg4: memref<16x256xf32, #tpu.memory_space<vmem>>, %arg5: memref<16x256xf32, #tpu.memory_space<vmem>>, %arg6: memref<16x256xf32, #tpu.memory_space<vmem>>) attributes {dimension_semantics = [#tpu.dimension_semantics<parallel>], iteration_bounds = array<i64: 1>, scalar_prefetch = 0 : i64, scratch_operands = 0 : i64, tpu.core_type = #tpu.core_type<tc>, window_params = [{transform_indices = @transform_0, window_bounds = array<i64: 16, 32>}, {pipeline_mode = #tpu.pipeline_mode<synchronous>, transform_indices = @transform_1, window_bounds = array<i64: 32, 768>}, {pipeline_mode = #tpu.pipeline_mode<synchronous>, transform_indices = @transform_2, window_bounds = array<i64: 1, 768>}, {transform_indices = @transform_3, window_bounds = array<i64: 16, 256>}, {transform_indices = @transform_4, window_bounds = array<i64: 16, 256>}, {transform_indices = @transform_5, window_bounds = array<i64: 16, 256>}]} {
    %c0 = arith.constant 0 : index
    %c0_0 = arith.constant 0 : index
    %0 = vector.load %arg1[%c0, %c0_0] : memref<16x32xf32, #tpu.memory_space<vmem>>, vector<16x32xf32>
    %c0_1 = arith.constant 0 : index
    %c0_2 = arith.constant 0 : index
    %1 = vector.load %arg2[%c0_1, %c0_2] : memref<32x768xf32, #tpu.memory_space<vmem>>, vector<32x768xf32>
    %cst = arith.constant dense<0.000000e+00> : vector<16x768xf32>
    %2 = tpu.matmul %0, %1, %cst {dimension_numbers = #tpu.dot_dimension_numbers<[1], [0], [0], [1], [0, 0, 1, 1], [], []>} : vector<16x32xf32>, vector<32x768xf32>, vector<16x768xf32> -> vector<16x768xf32>
    %c0_3 = arith.constant 0 : index
    %c0_4 = arith.constant 0 : index
    %3 = vector.load %arg3[%c0_3, %c0_4] : memref<1x768xf32, #tpu.memory_space<vmem>>, vector<1x768xf32>
    %4 = vector.broadcast %3 : vector<1x768xf32> to vector<16x768xf32>
    %5 = arith.addf %2, %4 : vector<16x768xf32>
    %6 = vector.extract_strided_slice %5 {offsets = [0, 0], sizes = [16, 256], strides = [1, 1]} : vector<16x768xf32> to vector<16x256xf32>
    %c0_5 = arith.constant 0 : index
    %c0_6 = arith.constant 0 : index
    %7 = vector.load %arg4[%c0_5, %c0_6] : memref<16x256xf32, #tpu.memory_space<vmem>>, vector<16x256xf32>
    tpu.vector_store %arg4[%c0_5, %c0_6], %6 {strides = array<i32>} : memref<16x256xf32, #tpu.memory_space<vmem>>, vector<16x256xf32>,
    %8 = vector.extract_strided_slice %5 {offsets = [0, 256], sizes = [16, 256], strides = [1, 1]} : vector<16x768xf32> to vector<16x256xf32>
    %c0_7 = arith.constant 0 : index
    %c0_8 = arith.constant 0 : index
    %9 = vector.load %arg5[%c0_7, %c0_8] : memref<16x256xf32, #tpu.memory_space<vmem>>, vector<16x256xf32>
    tpu.vector_store %arg5[%c0_7, %c0_8], %8 {strides = array<i32>} : memref<16x256xf32, #tpu.memory_space<vmem>>, vector<16x256xf32>,
    %10 = vector.extract_strided_slice %5 {offsets = [0, 512], sizes = [16, 256], strides = [1, 1]} : vector<16x768xf32> to vector<16x256xf32>
    %c0_9 = arith.constant 0 : index
    %c0_10 = arith.constant 0 : index
    %11 = vector.load %arg6[%c0_9, %c0_10] : memref<16x256xf32, #tpu.memory_space<vmem>>, vector<16x256xf32>
    tpu.vector_store %arg6[%c0_9, %c0_10], %10 {strides = array<i32>} : memref<16x256xf32, #tpu.memory_space<vmem>>, vector<16x256xf32>,
    return
  }
  func.func @transform_0(%arg0: i32) -> (i32, i32) {
    %c0_i32 = arith.constant 0 : i32
    %c0_i32_0 = arith.constant 0 : i32
    return %arg0, %c0_i32 : i32, i32
  }
  func.func @transform_1(%arg0: i32) -> (i32, i32) {
    %c0_i32 = arith.constant 0 : i32
    %c0_i32_0 = arith.constant 0 : i32
    %c0_i32_1 = arith.constant 0 : i32
    return %c0_i32, %c0_i32_0 : i32, i32
  }
  func.func @transform_2(%arg0: i32) -> (i32, i32) {
    %c0_i32 = arith.constant 0 : i32
    %c0_i32_0 = arith.constant 0 : i32
    %c0_i32_1 = arith.constant 0 : i32
    return %c0_i32, %c0_i32_0 : i32, i32
  }
  func.func @transform_3(%arg0: i32) -> (i32, i32) {
    %c0_i32 = arith.constant 0 : i32
    %c0_i32_0 = arith.constant 0 : i32
    return %arg0, %c0_i32 : i32, i32
  }
  func.func @transform_4(%arg0: i32) -> (i32, i32) {
    %c0_i32 = arith.constant 0 : i32
    %c0_i32_0 = arith.constant 0 : i32
    return %arg0, %c0_i32 : i32, i32
  }
  func.func @transform_5(%arg0: i32) -> (i32, i32) {
    %c0_i32 = arith.constant 0 : i32
    %c0_i32_0 = arith.constant 0 : i32
    return %arg0, %c0_i32 : i32, i32
  }
}

module attributes {stable_mosaic.version = 11 : i64} {
  func.func @_qkv_fused_kernel(%arg0: i32, %arg1: memref<16x32xf32, #tpu.memory_space<vmem>>, %arg2: memref<32x768xf32, #tpu.memory_space<vmem>>, %arg3: memref<1x768xf32, #tpu.memory_space<vmem>>, %arg4: memref<16x256xf32, #tpu.memory_space<vmem>>, %arg5: memref<16x256xf32, #tpu.memory_space<vmem>>, %arg6: memref<16x256xf32, #tpu.memory_space<vmem>>) attributes {dimension_semantics = [#tpu.dimension_semantics<parallel>], iteration_bounds = array<i64: 1>, scalar_prefetch = 0 : i64, scratch_operands = 0 : i64, tpu.core_type = #tpu.core_type<tc>, window_params = [{transform_indices = @transform_0, window_bounds = array<i64: 16, 32>}, {pipeline_mode = #tpu.pipeline_mode<synchronous>, transform_indices = @transform_1, window_bounds = array<i64: 32, 768>}, {pipeline_mode = #tpu.pipeline_mode<synchronous>, transform_indices = @transform_2, window_bounds = array<i64: 1, 768>}, {transform_indices = @transform_3, window_bounds = array<i64: 16, 256>}, {transform_indices = @transform_4, window_bounds = array<i64: 16, 256>}, {transform_indices = @transform_5, window_bounds = array<i64: 16, 256>}]} {
    %c0 = arith.constant 0 : index
    %c0_0 = arith.constant 0 : index
    %0 = vector.load %arg1[%c0, %c0_0] : memref<16x32xf32, #tpu.memory_space<vmem>>, vector<16x32xf32>
    %c0_1 = arith.constant 0 : index
    %c0_2 = arith.constant 0 : index
    %1 = vector.load %arg2[%c0_1, %c0_2] : memref<32x768xf32, #tpu.memory_space<vmem>>, vector<32x768xf32>
    %cst = arith.constant dense<0.000000e+00> : vector<16x768xf32>
    %2 = tpu.matmul %0, %1, %cst {dimension_numbers = #tpu.dot_dimension_numbers<[1], [0], [0], [1], [0, 0, 1, 1], [], []>} : vector<16x32xf32>, vector<32x768xf32>, vector<16x768xf32> -> vector<16x768xf32>
    %c0_3 = arith.constant 0 : index
    %c0_4 = arith.constant 0 : index
    %3 = vector.load %arg3[%c0_3, %c0_4] : memref<1x768xf32, #tpu.memory_space<vmem>>, vector<1x768xf32>
    %4 = vector.broadcast %3 : vector<1x768xf32> to vector<16x768xf32>
    %5 = arith.addf %2, %4 : vector<16x768xf32>
    %6 = vector.extract_strided_slice %5 {offsets = [0, 0], sizes = [16, 256], strides = [1, 1]} : vector<16x768xf32> to vector<16x256xf32>
    %c0_5 = arith.constant 0 : index
    %c0_6 = arith.constant 0 : index
    %7 = vector.load %arg4[%c0_5, %c0_6] : memref<16x256xf32, #tpu.memory_space<vmem>>, vector<16x256xf32>
    tpu.vector_store %arg4[%c0_5, %c0_6], %6 {strides = array<i32>} : memref<16x256xf32, #tpu.memory_space<vmem>>, vector<16x256xf32>,
    %8 = vector.extract_strided_slice %5 {offsets = [0, 256], sizes = [16, 256], strides = [1, 1]} : vector<16x768xf32> to vector<16x256xf32>
    %c0_7 = arith.constant 0 : index
    %c0_8 = arith.constant 0 : index
    %9 = vector.load %arg5[%c0_7, %c0_8] : memref<16x256xf32, #tpu.memory_space<vmem>>, vector<16x256xf32>
    tpu.vector_store %arg5[%c0_7, %c0_8], %8 {strides = array<i32>} : memref<16x256xf32, #tpu.memory_space<vmem>>, vector<16x256xf32>,
    %10 = vector.extract_strided_slice %5 {offsets = [0, 512], sizes = [16, 256], strides = [1, 1]} : vector<16x768xf32> to vector<16x256xf32>
    %c0_9 = arith.constant 0 : index
    %c0_10 = arith.constant 0 : index
    %11 = vector.load %arg6[%c0_9, %c0_10] : memref<16x256xf32, #tpu.memory_space<vmem>>, vector<16x256xf32>
    tpu.vector_store %arg6[%c0_9, %c0_10], %10 {strides = array<i32>} : memref<16x256xf32, #tpu.memory_space<vmem>>, vector<16x256xf32>,
    return
  }
  func.func @transform_0(%arg0: i32) -> (i32, i32) {
    %c0_i32 = arith.constant 0 : i32
    %c0_i32_0 = arith.constant 0 : i32
    return %arg0, %c0_i32 : i32, i32
  }
  func.func @transform_1(%arg0: i32) -> (i32, i32) {
    %c0_i32 = arith.constant 0 : i32
    %c0_i32_0 = arith.constant 0 : i32
    %c0_i32_1 = arith.constant 0 : i32
    return %c0_i32, %c0_i32_0 : i32, i32
  }
  func.func @transform_2(%arg0: i32) -> (i32, i32) {
    %c0_i32 = arith.constant 0 : i32
    %c0_i32_0 = arith.constant 0 : i32
    %c0_i32_1 = arith.constant 0 : i32
    return %c0_i32, %c0_i32_0 : i32, i32
  }
  func.func @transform_3(%arg0: i32) -> (i32, i32) {
    %c0_i32 = arith.constant 0 : i32
    %c0_i32_0 = arith.constant 0 : i32
    return %arg0, %c0_i32 : i32, i32
  }
  func.func @transform_4(%arg0: i32) -> (i32, i32) {
    %c0_i32 = arith.constant 0 : i32
    %c0_i32_0 = arith.constant 0 : i32
    return %arg0, %c0_i32 : i32, i32
  }
  func.func @transform_5(%arg0: i32) -> (i32, i32) {
    %c0_i32 = arith.constant 0 : i32
    %c0_i32_0 = arith.constant 0 : i32
    return %arg0, %c0_i32 : i32, i32
  }
}

</mosaic_0001>

<bundles_post_ra>
// kernel: tpu_custom_call.1
= control target key start
LH: loop header
LB: loop body
LE: loop exit
PB: predicated region body
PF: predicated region fallthrough
CT: control target
= control target key end

     0   :  { %11 = vsyncpa [#allocation3], 0  ;;  %s581_s0 = inlined_call_operand.hbm [shape: f32[16,32], index: 0, kind: input, shape index: {}]   ;;  %s582_s1 = inlined_call_operand.hbm [shape: f32[32,768], index: 1, kind: input, shape index: {}]   ;;  %s583_s2 = inlined_call_operand.hbm [shape: f32[1,768], index: 2, kind: input, shape index: {}]   ;;  %s584_s3 = inlined_call_operand.hbm [shape: f32[16,256], index: 3, kind: output, shape index: {0}]   ;;  %s585_s4 = inlined_call_operand.hbm [shape: f32[16,256], index: 4, kind: output, shape index: {1}]   ;;  %s586_s5 = inlined_call_operand.hbm [shape: f32[16,256], index: 5, kind: output, shape index: {2}]  }
   0x1   :  { %12 = vsyncpa [#allocation6], 0 }
   0x2   :  { %13 = vsyncpa [#allocation4], 0  ;;  %s32_s20 = sshll.u32 %s582_s1, 4  ;;  %s33_s20 = int_to_ptr.hbm [resolvable:$true] %s32_s20 }
   0x3   :  { %14 = vsyncpa [#allocation10], 0  ;;  %s500_s21 = smov [#allocation5]   ;;  %s19_s25 = sshll.u32 %s581_s0, 4  ;;  %s20_s25 = int_to_ptr.hbm [resolvable:$true] %s19_s25 }
   0x4   :  { %s34_s22 = sshll.u32 %s500_s21, 4  ;;  %s501_s26 = smov 768   ;;  %s35_s22 = int_to_ptr.vmem [resolvable:$true] %s34_s22 }
   0x5   :  { %s502_s27 = smov 48   ;;  %s503_s28 = smov [#allocation2]  }
   0x6   :  { %40 = dma.hbm_to_vmem [thread:$0]  %s33_s20, 3072, %s35_s22, [#allocation6], %s501_s26, %s501_s26, %s502_s27  }
   0x7   :  { %s21_s29 = sshll.u32 %s503_s28, 4  ;;  %s504_s30 = smov 128   ;;  %s22_s29 = int_to_ptr.vmem [resolvable:$true] %s21_s29 }
   0x8   :  { %s505_s6 = smov 8   ;;  %s46_s8 = sshll.u32 %s583_s2, 4  ;;  %s47_s8 = int_to_ptr.hbm [resolvable:$true] %s46_s8 }
   0x9   :  { %27 = dma.hbm_to_vmem [thread:$0]  %s20_s25, 256, %s22_s29, [#allocation3], %s504_s30, %s504_s30, %s505_s6  }
   0xa   :  { %s506_s9 = smov [#allocation7]  }
   0xb   :  { %s48_s10 = sshll.u32 %s506_s9, 4  ;;  %s49_s10 = int_to_ptr.vmem [resolvable:$true] %s48_s10 }
   0xc   :  { %51 = dma.hbm_to_vmem [thread:$0]  %s47_s8, 96, %s49_s10, [#allocation6]  }
   0xd   :  { %492 = dma.done.wait [#allocation3], 256  }
   0xe   :  { %493 = vsyncadd [#allocation3], 4294967040 }
   0xf   :  { %494 = dma.done.wait [#allocation6], 3168  }
  0x10   :  { %495 = vsyncadd [#allocation6], 4294964128  ;;  %v84_v0 = vld [vmem:[#allocation5 + $0x90] sm:$0xff]  ;;  %v85_v1 = vld [vmem:[#allocation5 + $0x98] sm:$0xff]  ;;  %vm104_vm0 = vcmask 261120   ;;  %s507_s0 = smov [#allocation8]  }
  0x11   :  { %v78_v2 = vld [vmem:[#allocation5 + $0x60] sm:$0xff]  ;;  %328 = vmatpush.msra.mxu2 %v84_v0  ;;  %332 = vmatpush.msra.mxu3 %v85_v1  ;;  %v79_v3 = vld [vmem:[#allocation5 + $0x68] sm:$0xff]  ;;  %v72_v4 = vld [vmem:[#allocation5 + $0x30] sm:$0xff]  ;;  %s265_s2 = sshll.u32 %s507_s0, 4  ;;  %s267_s13 = sshll.u32 %s584_s3, 4  ;;  %s266_s2 = int_to_ptr.vmem [resolvable:$true] %s265_s2  ;;  %s268_s13 = int_to_ptr.hbm [resolvable:$true] %s267_s13 }
  0x12   :  { %v73_v5 = vld [vmem:[#allocation5 + $0x38] sm:$0xff]  ;;  %123 = vmatpush.msra.mxu0 %v84_v0  ;;  %146 = vmatpush.msra.mxu1 %v85_v1  ;;  %v66_v6 = vld [vmem:[#allocation5] sm:$0xff]  ;;  %v67_v7 = vld [vmem:[#allocation5 + $0x8] sm:$0xff]  ;;  %s508_s14 = smov 256   ;;  %s509_s15 = smov 16  }
  0x13   :  { %329 = vmatpush.msra.mxu2 %v78_v2  ;;  %333 = vmatpush.msra.mxu3 %v79_v3  ;;  %v65_v8 = vld [vmem:[#allocation2 + $0x8] sm:$0xff]  ;;  %v86_v9 = vld [vmem:[#allocation5 + $0xa0] sm:$0xff]  ;;  %v87_v10 = vld [vmem:[#allocation5 + $0xa8] sm:$0xff]  ;;  %s510_s3 = smov [#allocation9]   ;;  %s280_s19 = sshll.u32 %s585_s4, 4  ;;  %s281_s19 = int_to_ptr.hbm [resolvable:$true] %s280_s19 }
  0x14   :  { %124 = vmatpush.msra.mxu0 %v78_v2  ;;  %147 = vmatpush.msra.mxu1 %v79_v3  ;;  %v80_v11 = vld [vmem:[#allocation5 + $0x70] sm:$0xff]  ;;  %v81_v12 = vld [vmem:[#allocation5 + $0x78] sm:$0xff]  ;;  %v74_v14 = vld [vmem:[#allocation5 + $0x40] sm:$0xff]  ;;  %s278_s16 = sshll.u32 %s510_s3, 4  ;;  %s511_s20 = smov [#allocation11]   ;;  %s279_s16 = int_to_ptr.vmem [resolvable:$true] %s278_s16 }
  0x15   :  { %330 = vmatpush.msra.mxu2 %v72_v4  ;;  %334 = vmatpush.msra.mxu3 %v73_v5  ;;  %v64_v13 = vld [vmem:[#allocation2] sm:$0xff]  ;;  %v75_v15 = vld [vmem:[#allocation5 + $0x48] sm:$0xff]  ;;  %v89_v17 = vld [vmem:[#allocation5 + $0xb8] sm:$0xff]  ;;  %s291_s21 = sshll.u32 %s511_s20, 4  ;;  %s293_s24 = sshll.u32 %s586_s5, 4  ;;  %s292_s21 = int_to_ptr.vmem [resolvable:$true] %s291_s21  ;;  %s294_s24 = int_to_ptr.hbm [resolvable:$true] %s293_s24 }
  0x16   :  { %125 = vmatpush.msra.mxu0 %v72_v4  ;;  %148 = vmatpush.msra.mxu1 %v73_v5  ;;  %v88_v16 = vld [vmem:[#allocation5 + $0xb0] sm:$0xff]  ;;  %v69_v19 = vld [vmem:[#allocation5 + $0x18] sm:$0xff]  ;;  %v82_v20 = vld [vmem:[#allocation5 + $0x80] sm:$0xff] }
  0x17   :  { %331 = vmatpush.msra.mxu2 %v66_v6  ;;  %335 = vmatpush.msra.mxu3 %v67_v7  ;;  %v68_v18 = vld [vmem:[#allocation5 + $0x10] sm:$0xff]  ;;  %v83_v21 = vld [vmem:[#allocation5 + $0x88] sm:$0xff]  ;;  %v77_v23 = vld [vmem:[#allocation5 + $0x58] sm:$0xff] }
  0x18   :  { %317 = vmatmul.msk.f32.vlgmr.msra.gmra.mxu2 %vm104_vm0, %v65_v8  ;;  %319 = vmatmul.msk.f32.vlgmr.msra.gmra.mxu3 %vm104_vm0, %v65_v8  ;;  %v76_v22 = vld [vmem:[#allocation5 + $0x50] sm:$0xff]  ;;  %v70_v24 = vld [vmem:[#allocation5 + $0x20] sm:$0xff]  ;;  %v71_v25 = vld [vmem:[#allocation5 + $0x28] sm:$0xff] }
  0x19   :  { %169 = vmatpush.msrb.mxu2 %v86_v9  ;;  %192 = vmatpush.msrb.mxu3 %v87_v10  ;;  %v90_v26 = vld [vmem:[#allocation7] sm:$0x3f] }
  0x1a   :  { %126 = vmatpush.msra.mxu0 %v66_v6  ;;  %149 = vmatpush.msra.mxu1 %v67_v7  ;;  %v92_v27 = vperm.slane %v90_v26, 0  ;;  %v93_v28 = vperm.slane %v90_v26, 1  ;;  %v94_v37 = vperm.slane %v90_v26, 2  ;;  %v95_v38 = vperm.slane %v90_v26, 3 }
  0x1b   :  { %170 = vmatpush.msrb.mxu2 %v80_v11  ;;  %193 = vmatpush.msrb.mxu3 %v81_v12  ;;  %v96_v39 = vperm.slane %v90_v26, 4  ;;  %v97_v40 = vperm.slane %v90_v26, 5 }
  0x1c   :  { %316 = vmatmul.msk.f32.vlgmr.msra.gmra.mxu0 %vm104_vm0, %v64_v13  ;;  %318 = vmatmul.msk.f32.vlgmr.msra.gmra.mxu1 %vm104_vm0, %v64_v13 }
  0x1d   :  { %171 = vmatpush.msrb.mxu2 %v74_v14  ;;  %194 = vmatpush.msrb.mxu3 %v75_v15 }
  0x1e   :  { %215 = vmatpush.msrb.mxu0 %v88_v16  ;;  %238 = vmatpush.msrb.mxu1 %v89_v17 }
  0x1f   :  { %172 = vmatpush.msrb.mxu2 %v68_v18  ;;  %195 = vmatpush.msrb.mxu3 %v69_v19 }
  0x20   :  { %320 = vmatmul.msk.f32.vlgmr.msrb.gmra.mxu2 %vm104_vm0, %v64_v13  ;;  %322 = vmatmul.msk.f32.vlgmr.msrb.gmra.mxu3 %vm104_vm0, %v64_v13 }
  0x21   :  { %216 = vmatpush.msrb.mxu0 %v82_v20  ;;  %239 = vmatpush.msrb.mxu1 %v83_v21 }
  0x23   :  { %217 = vmatpush.msrb.mxu0 %v76_v22  ;;  %240 = vmatpush.msrb.mxu1 %v77_v23 }
  0x25   :  { %218 = vmatpush.msrb.mxu0 %v70_v24  ;;  %241 = vmatpush.msrb.mxu1 %v71_v25 }
  0x26   :  { %324 = vmatmul.msk.f32.vlgmr.msrb.gmra.mxu0 %vm104_vm0, %v64_v13  ;;  %326 = vmatmul.msk.f32.vlgmr.msrb.gmra.mxu1 %vm104_vm0, %v64_v13 }
  0x28   :  { %321 = vmatmul.msk.f32.gmra.mxu2 %vm104_vm0, %v65_v8  ;;  %323 = vmatmul.msk.f32.gmra.mxu3 %vm104_vm0, %v65_v8 }
  0x2e   :  { %325 = vmatmul.msk.f32.gmra.mxu0 %vm104_vm0, %v65_v8  ;;  %327 = vmatmul.msk.f32.gmra.mxu1 %vm104_vm0, %v65_v8 }
  0x99   :  { %v128_v29 = vpop.f32.mrf.mxu0  ;;  %v151_v30 = vpop.f32.mrf.mxu1 }
  0x9a   :  { %v129_v31 = vadd.f32 %v128_v29, %v92_v27  ;;  %v152_v32 = vadd.f32 %v151_v30, %v93_v28 }
  0x9b   :  { %v131_v33 = vpop.f32.mrf.mxu2  ;;  %v154_v34 = vpop.f32.mrf.mxu3 }
  0x9c   :  { %v132_v35 = vadd.f32 %v131_v33, %v92_v27  ;;  %v155_v36 = vadd.f32 %v154_v34, %v93_v28  ;;  %249 = vst [vmem:[#allocation8] sm:$0xff] %v129_v31 }
  0x9d   :  { %250 = vst [vmem:[#allocation8 + $0x8] sm:$0xff] %v152_v32 }
  0x9e   :  { %251 = vst [vmem:[#allocation8 + $0x10] sm:$0xff] %v132_v35 }
  0x9f   :  { %252 = vst [vmem:[#allocation8 + $0x18] sm:$0xff] %v155_v36 }
  0xa0   :  { %273 = dma.vmem_to_hbm [thread:$0]  %s266_s2, 512, %s268_s13, [#allocation4], %s508_s14, %s508_s14, %s509_s15  }
  0xa3   :  { %v174_v41 = vpop.f32.mrf.mxu2  ;;  %v197_v42 = vpop.f32.mrf.mxu3 }
  0xa4   :  { %v175_v43 = vadd.f32 %v174_v41, %v94_v37  ;;  %v198_v44 = vadd.f32 %v197_v42, %v95_v38  ;;  %v220_v45 = vpop.f32.mrf.mxu0  ;;  %v243_v46 = vpop.f32.mrf.mxu1 }
  0xa5   :  { %v221_v47 = vadd.f32 %v220_v45, %v96_v39  ;;  %v244_v48 = vadd.f32 %v243_v46, %v97_v40 }
  0xa6   :  { %253 = vst [vmem:[#allocation9] sm:$0xff] %v175_v43 }
  0xa7   :  { %254 = vst [vmem:[#allocation9 + $0x8] sm:$0xff] %v198_v44 }
  0xa8   :  { %257 = vst [vmem:[#allocation11] sm:$0xff] %v221_v47 }
  0xa9   :  { %258 = vst [vmem:[#allocation11 + $0x8] sm:$0xff] %v244_v48 }
  0xab   :  { %v177_v49 = vpop.f32.mrf.mxu2  ;;  %v200_v50 = vpop.f32.mrf.mxu3 }
  0xac   :  { %v178_v51 = vadd.f32 %v177_v49, %v94_v37  ;;  %v201_v52 = vadd.f32 %v200_v50, %v95_v38  ;;  %v223_v53 = vpop.f32.mrf.mxu0  ;;  %v246_v54 = vpop.f32.mrf.mxu1 }
  0xad   :  { %v224_v55 = vadd.f32 %v223_v53, %v96_v39  ;;  %v247_v56 = vadd.f32 %v246_v54, %v97_v40 }
  0xae   :  { %255 = vst [vmem:[#allocation9 + $0x10] sm:$0xff] %v178_v51 }
  0xaf   :  { %256 = vst [vmem:[#allocation9 + $0x18] sm:$0xff] %v201_v52 }
  0xb0   :  { %259 = vst [vmem:[#allocation11 + $0x10] sm:$0xff] %v224_v55  ;;  %286 = dma.vmem_to_hbm [thread:$0]  %s279_s16, 512, %s281_s19, [#allocation10], %s508_s14, %s508_s14, %s509_s15  }
  0xb1   :  { %260 = vst [vmem:[#allocation11 + $0x18] sm:$0xff] %v247_v56 }
  0xb2   :  { %299 = dma.vmem_to_hbm [thread:$0]  %s292_s21, 512, %s294_s24, [#allocation10], %s508_s14, %s508_s14, %s509_s15  }
  0xb3   :  { %496 = dma.done.wait [#allocation4], 512  }
  0xb4   :  { %497 = vsyncadd [#allocation4], 4294966784 }
  0xb5   :  { %498 = dma.done.wait [#allocation10], 1024  }
  0xb6   :  { %499 = vsyncadd [#allocation10], 4294966272 }
  0xb7   :  { %312 = vsyncpa [#allocation3], 1 }
  0xb8   :  { %313 = vsyncpa [#allocation6], 1 }
  0xb9   :  { %314 = vsyncpa [#allocation4], 1 }
  0xba   :  { %315 = vsyncpa [#allocation10], 1 }

// kernel: tpu_custom_call.1
= control target key start
LH: loop header
LB: loop body
LE: loop exit
PB: predicated region body
PF: predicated region fallthrough
CT: control target
= control target key end

     0   :  { %11 = vsyncpa [#allocation3], 0  ;;  %s581_s0 = inlined_call_operand.hbm [shape: f32[16,32], index: 0, kind: input, shape index: {}]   ;;  %s582_s1 = inlined_call_operand.hbm [shape: f32[32,768], index: 1, kind: input, shape index: {}]   ;;  %s583_s2 = inlined_call_operand.hbm [shape: f32[1,768], index: 2, kind: input, shape index: {}]   ;;  %s584_s3 = inlined_call_operand.hbm [shape: f32[16,256], index: 3, kind: output, shape index: {0}]   ;;  %s585_s4 = inlined_call_operand.hbm [shape: f32[16,256], index: 4, kind: output, shape index: {1}]   ;;  %s586_s5 = inlined_call_operand.hbm [shape: f32[16,256], index: 5, kind: output, shape index: {2}]  }
   0x1   :  { %12 = vsyncpa [#allocation6], 0 }
   0x2   :  { %13 = vsyncpa [#allocation4], 0  ;;  %s32_s20 = sshll.u32 %s582_s1, 4  ;;  %s33_s20 = int_to_ptr.hbm [resolvable:$true] %s32_s20 }
   0x3   :  { %14 = vsyncpa [#allocation10], 0  ;;  %s500_s21 = smov [#allocation5]   ;;  %s19_s25 = sshll.u32 %s581_s0, 4  ;;  %s20_s25 = int_to_ptr.hbm [resolvable:$true] %s19_s25 }
   0x4   :  { %s34_s22 = sshll.u32 %s500_s21, 4  ;;  %s501_s26 = smov 768   ;;  %s35_s22 = int_to_ptr.vmem [resolvable:$true] %s34_s22 }
   0x5   :  { %s502_s27 = smov 48   ;;  %s503_s28 = smov [#allocation2]  }
   0x6   :  { %40 = dma.hbm_to_vmem [thread:$0]  %s33_s20, 3072, %s35_s22, [#allocation6], %s501_s26, %s501_s26, %s502_s27  }
   0x7   :  { %s21_s29 = sshll.u32 %s503_s28, 4  ;;  %s504_s30 = smov 128   ;;  %s22_s29 = int_to_ptr.vmem [resolvable:$true] %s21_s29 }
   0x8   :  { %s505_s6 = smov 8   ;;  %s46_s8 = sshll.u32 %s583_s2, 4  ;;  %s47_s8 = int_to_ptr.hbm [resolvable:$true] %s46_s8 }
   0x9   :  { %27 = dma.hbm_to_vmem [thread:$0]  %s20_s25, 256, %s22_s29, [#allocation3], %s504_s30, %s504_s30, %s505_s6  }
   0xa   :  { %s506_s9 = smov [#allocation7]  }
   0xb   :  { %s48_s10 = sshll.u32 %s506_s9, 4  ;;  %s49_s10 = int_to_ptr.vmem [resolvable:$true] %s48_s10 }
   0xc   :  { %51 = dma.hbm_to_vmem [thread:$0]  %s47_s8, 96, %s49_s10, [#allocation6]  }
   0xd   :  { %492 = dma.done.wait [#allocation3], 256  }
   0xe   :  { %493 = vsyncadd [#allocation3], 4294967040 }
   0xf   :  { %494 = dma.done.wait [#allocation6], 3168  }
  0x10   :  { %495 = vsyncadd [#allocation6], 4294964128  ;;  %v84_v0 = vld [vmem:[#allocation5 + $0x90] sm:$0xff]  ;;  %v85_v1 = vld [vmem:[#allocation5 + $0x98] sm:$0xff]  ;;  %vm104_vm0 = vcmask 261120   ;;  %s507_s0 = smov [#allocation8]  }
  0x11   :  { %v78_v2 = vld [vmem:[#allocation5 + $0x60] sm:$0xff]  ;;  %328 = vmatpush.msra.mxu2 %v84_v0  ;;  %332 = vmatpush.msra.mxu3 %v85_v1  ;;  %v79_v3 = vld [vmem:[#allocation5 + $0x68] sm:$0xff]  ;;  %v72_v4 = vld [vmem:[#allocation5 + $0x30] sm:$0xff]  ;;  %s265_s2 = sshll.u32 %s507_s0, 4  ;;  %s267_s13 = sshll.u32 %s584_s3, 4  ;;  %s266_s2 = int_to_ptr.vmem [resolvable:$true] %s265_s2  ;;  %s268_s13 = int_to_ptr.hbm [resolvable:$true] %s267_s13 }
  0x12   :  { %v73_v5 = vld [vmem:[#allocation5 + $0x38] sm:$0xff]  ;;  %123 = vmatpush.msra.mxu0 %v84_v0  ;;  %146 = vmatpush.msra.mxu1 %v85_v1  ;;  %v66_v6 = vld [vmem:[#allocation5] sm:$0xff]  ;;  %v67_v7 = vld [vmem:[#allocation5 + $0x8] sm:$0xff]  ;;  %s508_s14 = smov 256   ;;  %s509_s15 = smov 16  }
  0x13   :  { %329 = vmatpush.msra.mxu2 %v78_v2  ;;  %333 = vmatpush.msra.mxu3 %v79_v3  ;;  %v65_v8 = vld [vmem:[#allocation2 + $0x8] sm:$0xff]  ;;  %v86_v9 = vld [vmem:[#allocation5 + $0xa0] sm:$0xff]  ;;  %v87_v10 = vld [vmem:[#allocation5 + $0xa8] sm:$0xff]  ;;  %s510_s3 = smov [#allocation9]   ;;  %s280_s19 = sshll.u32 %s585_s4, 4  ;;  %s281_s19 = int_to_ptr.hbm [resolvable:$true] %s280_s19 }
  0x14   :  { %124 = vmatpush.msra.mxu0 %v78_v2  ;;  %147 = vmatpush.msra.mxu1 %v79_v3  ;;  %v80_v11 = vld [vmem:[#allocation5 + $0x70] sm:$0xff]  ;;  %v81_v12 = vld [vmem:[#allocation5 + $0x78] sm:$0xff]  ;;  %v74_v14 = vld [vmem:[#allocation5 + $0x40] sm:$0xff]  ;;  %s278_s16 = sshll.u32 %s510_s3, 4  ;;  %s511_s20 = smov [#allocation11]   ;;  %s279_s16 = int_to_ptr.vmem [resolvable:$true] %s278_s16 }
  0x15   :  { %330 = vmatpush.msra.mxu2 %v72_v4  ;;  %334 = vmatpush.msra.mxu3 %v73_v5  ;;  %v64_v13 = vld [vmem:[#allocation2] sm:$0xff]  ;;  %v75_v15 = vld [vmem:[#allocation5 + $0x48] sm:$0xff]  ;;  %v89_v17 = vld [vmem:[#allocation5 + $0xb8] sm:$0xff]  ;;  %s291_s21 = sshll.u32 %s511_s20, 4  ;;  %s293_s24 = sshll.u32 %s586_s5, 4  ;;  %s292_s21 = int_to_ptr.vmem [resolvable:$true] %s291_s21  ;;  %s294_s24 = int_to_ptr.hbm [resolvable:$true] %s293_s24 }
  0x16   :  { %125 = vmatpush.msra.mxu0 %v72_v4  ;;  %148 = vmatpush.msra.mxu1 %v73_v5  ;;  %v88_v16 = vld [vmem:[#allocation5 + $0xb0] sm:$0xff]  ;;  %v69_v19 = vld [vmem:[#allocation5 + $0x18] sm:$0xff]  ;;  %v82_v20 = vld [vmem:[#allocation5 + $0x80] sm:$0xff] }
  0x17   :  { %331 = vmatpush.msra.mxu2 %v66_v6  ;;  %335 = vmatpush.msra.mxu3 %v67_v7  ;;  %v68_v18 = vld [vmem:[#allocation5 + $0x10] sm:$0xff]  ;;  %v83_v21 = vld [vmem:[#allocation5 + $0x88] sm:$0xff]  ;;  %v77_v23 = vld [vmem:[#allocation5 + $0x58] sm:$0xff] }
  0x18   :  { %317 = vmatmul.msk.f32.vlgmr.msra.gmra.mxu2 %vm104_vm0, %v65_v8  ;;  %319 = vmatmul.msk.f32.vlgmr.msra.gmra.mxu3 %vm104_vm0, %v65_v8  ;;  %v76_v22 = vld [vmem:[#allocation5 + $0x50] sm:$0xff]  ;;  %v70_v24 = vld [vmem:[#allocation5 + $0x20] sm:$0xff]  ;;  %v71_v25 = vld [vmem:[#allocation5 + $0x28] sm:$0xff] }
  0x19   :  { %169 = vmatpush.msrb.mxu2 %v86_v9  ;;  %192 = vmatpush.msrb.mxu3 %v87_v10  ;;  %v90_v26 = vld [vmem:[#allocation7] sm:$0x3f] }
  0x1a   :  { %126 = vmatpush.msra.mxu0 %v66_v6  ;;  %149 = vmatpush.msra.mxu1 %v67_v7  ;;  %v92_v27 = vperm.slane %v90_v26, 0  ;;  %v93_v28 = vperm.slane %v90_v26, 1  ;;  %v94_v37 = vperm.slane %v90_v26, 2  ;;  %v95_v38 = vperm.slane %v90_v26, 3 }
  0x1b   :  { %170 = vmatpush.msrb.mxu2 %v80_v11  ;;  %193 = vmatpush.msrb.mxu3 %v81_v12  ;;  %v96_v39 = vperm.slane %v90_v26, 4  ;;  %v97_v40 = vperm.slane %v90_v26, 5 }
  0x1c   :  { %316 = vmatmul.msk.f32.vlgmr.msra.gmra.mxu0 %vm104_vm0, %v64_v13  ;;  %318 = vmatmul.msk.f32.vlgmr.msra.gmra.mxu1 %vm104_vm0, %v64_v13 }
  0x1d   :  { %171 = vmatpush.msrb.mxu2 %v74_v14  ;;  %194 = vmatpush.msrb.mxu3 %v75_v15 }
  0x1e   :  { %215 = vmatpush.msrb.mxu0 %v88_v16  ;;  %238 = vmatpush.msrb.mxu1 %v89_v17 }
  0x1f   :  { %172 = vmatpush.msrb.mxu2 %v68_v18  ;;  %195 = vmatpush.msrb.mxu3 %v69_v19 }
  0x20   :  { %320 = vmatmul.msk.f32.vlgmr.msrb.gmra.mxu2 %vm104_vm0, %v64_v13  ;;  %322 = vmatmul.msk.f32.vlgmr.msrb.gmra.mxu3 %vm104_vm0, %v64_v13 }
  0x21   :  { %216 = vmatpush.msrb.mxu0 %v82_v20  ;;  %239 = vmatpush.msrb.mxu1 %v83_v21 }
  0x23   :  { %217 = vmatpush.msrb.mxu0 %v76_v22  ;;  %240 = vmatpush.msrb.mxu1 %v77_v23 }
  0x25   :  { %218 = vmatpush.msrb.mxu0 %v70_v24  ;;  %241 = vmatpush.msrb.mxu1 %v71_v25 }
  0x26   :  { %324 = vmatmul.msk.f32.vlgmr.msrb.gmra.mxu0 %vm104_vm0, %v64_v13  ;;  %326 = vmatmul.msk.f32.vlgmr.msrb.gmra.mxu1 %vm104_vm0, %v64_v13 }
  0x28   :  { %321 = vmatmul.msk.f32.gmra.mxu2 %vm104_vm0, %v65_v8  ;;  %323 = vmatmul.msk.f32.gmra.mxu3 %vm104_vm0, %v65_v8 }
  0x2e   :  { %325 = vmatmul.msk.f32.gmra.mxu0 %vm104_vm0, %v65_v8  ;;  %327 = vmatmul.msk.f32.gmra.mxu1 %vm104_vm0, %v65_v8 }
  0x99   :  { %v128_v29 = vpop.f32.mrf.mxu0  ;;  %v151_v30 = vpop.f32.mrf.mxu1 }
  0x9a   :  { %v129_v31 = vadd.f32 %v128_v29, %v92_v27  ;;  %v152_v32 = vadd.f32 %v151_v30, %v93_v28 }
  0x9b   :  { %v131_v33 = vpop.f32.mrf.mxu2  ;;  %v154_v34 = vpop.f32.mrf.mxu3 }
  0x9c   :  { %v132_v35 = vadd.f32 %v131_v33, %v92_v27  ;;  %v155_v36 = vadd.f32 %v154_v34, %v93_v28  ;;  %249 = vst [vmem:[#allocation8] sm:$0xff] %v129_v31 }
  0x9d   :  { %250 = vst [vmem:[#allocation8 + $0x8] sm:$0xff] %v152_v32 }
  0x9e   :  { %251 = vst [vmem:[#allocation8 + $0x10] sm:$0xff] %v132_v35 }
  0x9f   :  { %252 = vst [vmem:[#allocation8 + $0x18] sm:$0xff] %v155_v36 }
  0xa0   :  { %273 = dma.vmem_to_hbm [thread:$0]  %s266_s2, 512, %s268_s13, [#allocation4], %s508_s14, %s508_s14, %s509_s15  }
  0xa3   :  { %v174_v41 = vpop.f32.mrf.mxu2  ;;  %v197_v42 = vpop.f32.mrf.mxu3 }
  0xa4   :  { %v175_v43 = vadd.f32 %v174_v41, %v94_v37  ;;  %v198_v44 = vadd.f32 %v197_v42, %v95_v38  ;;  %v220_v45 = vpop.f32.mrf.mxu0  ;;  %v243_v46 = vpop.f32.mrf.mxu1 }
  0xa5   :  { %v221_v47 = vadd.f32 %v220_v45, %v96_v39  ;;  %v244_v48 = vadd.f32 %v243_v46, %v97_v40 }
  0xa6   :  { %253 = vst [vmem:[#allocation9] sm:$0xff] %v175_v43 }
  0xa7   :  { %254 = vst [vmem:[#allocation9 + $0x8] sm:$0xff] %v198_v44 }
  0xa8   :  { %257 = vst [vmem:[#allocation11] sm:$0xff] %v221_v47 }
  0xa9   :  { %258 = vst [vmem:[#allocation11 + $0x8] sm:$0xff] %v244_v48 }
  0xab   :  { %v177_v49 = vpop.f32.mrf.mxu2  ;;  %v200_v50 = vpop.f32.mrf.mxu3 }
  0xac   :  { %v178_v51 = vadd.f32 %v177_v49, %v94_v37  ;;  %v201_v52 = vadd.f32 %v200_v50, %v95_v38  ;;  %v223_v53 = vpop.f32.mrf.mxu0  ;;  %v246_v54 = vpop.f32.mrf.mxu1 }
  0xad   :  { %v224_v55 = vadd.f32 %v223_v53, %v96_v39  ;;  %v247_v56 = vadd.f32 %v246_v54, %v97_v40 }
  0xae   :  { %255 = vst [vmem:[#allocation9 + $0x10] sm:$0xff] %v178_v51 }
  0xaf   :  { %256 = vst [vmem:[#allocation9 + $0x18] sm:$0xff] %v201_v52 }
  0xb0   :  { %259 = vst [vmem:[#allocation11 + $0x10] sm:$0xff] %v224_v55  ;;  %286 = dma.vmem_to_hbm [thread:$0]  %s279_s16, 512, %s281_s19, [#allocation10], %s508_s14, %s508_s14, %s509_s15  }
  0xb1   :  { %260 = vst [vmem:[#allocation11 + $0x18] sm:$0xff] %v247_v56 }
  0xb2   :  { %299 = dma.vmem_to_hbm [thread:$0]  %s292_s21, 512, %s294_s24, [#allocation10], %s508_s14, %s508_s14, %s509_s15  }
  0xb3   :  { %496 = dma.done.wait [#allocation4], 512  }
  0xb4   :  { %497 = vsyncadd [#allocation4], 4294966784 }
  0xb5   :  { %498 = dma.done.wait [#allocation10], 1024  }
  0xb6   :  { %499 = vsyncadd [#allocation10], 4294966272 }
  0xb7   :  { %312 = vsyncpa [#allocation3], 1 }
  0xb8   :  { %313 = vsyncpa [#allocation6], 1 }
  0xb9   :  { %314 = vsyncpa [#allocation4], 1 }
  0xba   :  { %315 = vsyncpa [#allocation10], 1 }

</bundles_post_ra>
